<compile_context>
chip_gen: v7x
topology: tpu7x:2x2x1
jax: 0.10.0
libtpu: 0.0.40
codegen_flags: <defaults>
</compile_context>

<pallas_src>
import functools

import jax
import jax.numpy as jnp
import numpy as np
from jax.experimental import pallas as pl
from jax.experimental.pallas import tpu as pltpu

EPS = 1e-5  # PyTorch LayerNorm default eps


def _round_up(n, m):
    return (n + m - 1) // m * m


def _layernorm(x, g, b):
    mu = jnp.mean(x, axis=-1, keepdims=True)
    var = jnp.mean(jnp.square(x - mu), axis=-1, keepdims=True)
    return (x - mu) * jax.lax.rsqrt(var + EPS) * g + b


def signature_kernel(x_ref,
                     e_ln_g, e_ln_b, e_w1, e_b1, e_ln1_g, e_ln1_b, e_w2, e_b2,
                     b_ln_g, b_ln_b, b_w1, b_b1, b_ln1_g, b_ln1_b, b_w2, b_b2,
                     out_ref):
    e_dim = e_w2.shape[1]

    x = x_ref[...].astype(jnp.float32)

    # --- embed DNN_block ---
    h = _layernorm(x, e_ln_g[...], e_ln_b[...])                      # input LayerNorm
    h = jnp.dot(h.astype(e_w1.dtype), e_w1[...],
                preferred_element_type=jnp.float32) + e_b1[...]
    h = _layernorm(h, e_ln1_g[...], e_ln1_b[...])
    h = jnp.maximum(h, 0.0)                                          # ReLU
    e = jnp.dot(h.astype(e_w2.dtype), e_w2[...],
                preferred_element_type=jnp.float32) + e_b2[...]

    # --- bkg DNN_block (consumes e) ---
    g = _layernorm(e, b_ln_g[...], b_ln_b[...])                      # input LayerNorm
    g = jnp.dot(g.astype(b_w1.dtype), b_w1[...],
                preferred_element_type=jnp.float32) + b_b1[...]
    g = _layernorm(g, b_ln1_g[...], b_ln1_b[...])
    g = jnp.maximum(g, 0.0)                                          # ReLU
    b = jnp.dot(g.astype(b_w2.dtype), b_w2[...],
                preferred_element_type=jnp.float32) + b_b2[...]

    # Single concatenated output slab -> one writeback DMA stream per tile.
    out_ref[:, :e_dim] = e.astype(out_ref.dtype)
    out_ref[:, e_dim:] = b.astype(out_ref.dtype)


def init_params(key, embed_dims, bkg_dims):
    """Deterministic synthetic parameters mirroring the PyTorch module shapes."""
    def lin(k, din, dout):
        kw, kb = jax.random.split(k)
        bound = 1.0 / jnp.sqrt(float(din))
        w = jax.random.uniform(kw, (din, dout), jnp.float32, -bound, bound)  # [in, out]
        bias = jax.random.uniform(kb, (1, dout), jnp.float32, -bound, bound)
        return w, bias

    k = jax.random.split(key, 4)
    p = {}
    d0, d1, d2 = embed_dims
    p["e_ln_g"] = jnp.ones((1, d0), jnp.float32)
    p["e_ln_b"] = jnp.zeros((1, d0), jnp.float32)
    p["e_w1"], p["e_b1"] = lin(k[0], d0, d1)
    p["e_ln1_g"] = jnp.ones((1, d1), jnp.float32)
    p["e_ln1_b"] = jnp.zeros((1, d1), jnp.float32)
    p["e_w2"], p["e_b2"] = lin(k[1], d1, d2)
    c0, c1, c2 = bkg_dims
    assert c0 == d2, "bkg input dim must equal embed output dim"
    p["b_ln_g"] = jnp.ones((1, c0), jnp.float32)
    p["b_ln_b"] = jnp.zeros((1, c0), jnp.float32)
    p["b_w1"], p["b_b1"] = lin(k[2], c0, c1)
    p["b_ln1_g"] = jnp.ones((1, c1), jnp.float32)
    p["b_ln1_b"] = jnp.zeros((1, c1), jnp.float32)
    p["b_w2"], p["b_b2"] = lin(k[3], c1, c2)
    return p


@functools.partial(jax.jit, static_argnames=("block_rows", "use_bf16_matmul"))
def signature_discovery(x, params, *, block_rows=4096, use_bf16_matmul=False):
    """Runs the fused kernel; returns (e, b) with e=[B,d2], b=[B,c2]."""
    B, d0 = x.shape
    e_dim = params["e_w2"].shape[1]
    b_dim = params["b_w2"].shape[1]
    o_dim = e_dim + b_dim

    p = dict(params)
    if use_bf16_matmul:
        # bf16-native MXU path on v6e/v7x; accumulation stays f32 in-kernel.
        for k in ("e_w1", "e_w2", "b_w1", "b_w2"):
            p[k] = p[k].astype(jnp.bfloat16)

    # Batch tiling: round rows up to a multiple of 8 (f32 sublane), cap the tile
    # at `block_rows` (default 4096 ~= 0.5 MiB/buffer -> far under the v7x
    # 32 MiB scoped VMEM limit even with double-buffering), then pad the batch
    # so the grid divides evenly.  Padded rows are computed on zeros (no NaNs:
    # rsqrt(0 + eps) is finite) and sliced away afterwards.
    TB = min(block_rows, _round_up(B, 8))
    B_pad = _round_up(B, TB)
    if B_pad != B:
        x = jnp.pad(x, ((0, B_pad - B), (0, 0)))
    grid = (B_pad // TB,)

    args = (x,
            p["e_ln_g"], p["e_ln_b"], p["e_w1"], p["e_b1"],
            p["e_ln1_g"], p["e_ln1_b"], p["e_w2"], p["e_b2"],
            p["b_ln_g"], p["b_ln_b"], p["b_w1"], p["b_b1"],
            p["b_ln1_g"], p["b_ln1_b"], p["b_w2"], p["b_b2"])

    # x / out stream over the batch grid; every parameter gets a full-shape
    # block with a constant index_map so it stays resident in VMEM.
    x_spec = pl.BlockSpec((TB, d0), lambda i: (i, 0))
    param_specs = [pl.BlockSpec(a.shape, lambda i: (0, 0)) for a in args[1:]]
    out_spec = pl.BlockSpec((TB, o_dim), lambda i: (i, 0))

    # Advisory cost hint for XLA's scheduler.
    d1 = params["e_w1"].shape[1]
    c1 = params["b_w1"].shape[1]
    param_bytes = sum(int(np.prod(a.shape)) * a.dtype.itemsize for a in args[1:])
    cost = pl.CostEstimate(
        flops=2 * B_pad * (d0 * d1 + d1 * e_dim + e_dim * c1 + c1 * b_dim),
        transcendentals=4 * B_pad,  # one rsqrt per LayerNorm per row
        bytes_accessed=B_pad * (d0 + o_dim) * 4 + param_bytes,
    )

    out = pl.pallas_call(
        signature_kernel,
        out_shape=jax.ShapeDtypeStruct((B_pad, o_dim), jnp.float32),
        grid=grid,
        in_specs=[x_spec] + param_specs,
        out_specs=out_spec,
        compiler_params=pltpu.CompilerParams(
            dimension_semantics=("parallel",)),  # v7x: shard batch tiles across both TCs
        cost_estimate=cost,
    )(*args)

    e = out[:B, :e_dim]
    b = out[:B, e_dim:]
    return e, b


def signature_reference(x, params):
    """Pure-JAX reference of the PyTorch 2-D forward path."""
    def block(h, ln_g, ln_b, w1, b1, ln1_g, ln1_b, w2, b2):
        h = _layernorm(h, ln_g, ln_b)
        h = h @ w1 + b1
        h = _layernorm(h, ln1_g, ln1_b)
        h = jnp.maximum(h, 0.0)
        return h @ w2 + b2

    e = block(x, params["e_ln_g"], params["e_ln_b"], params["e_w1"], params["e_b1"],
              params["e_ln1_g"], params["e_ln1_b"], params["e_w2"], params["e_b2"])
    b = block(e, params["b_ln_g"], params["b_ln_b"], params["b_w1"], params["b_b1"],
              params["b_ln1_g"], params["b_ln1_b"], params["b_w2"], params["b_b2"])
    return e, b


if __name__ == "__main__":
    # embed_dimensions=[32, 64, 16], embed_normalize_input=True
    # bkg_dimensions  =[16, 32,  8], bkg_normalize_input=True
    embed_dims = (32, 64, 16)
    bkg_dims = (16, 32, 8)

    key = jax.random.PRNGKey(0)
    k_x, k_p = jax.random.split(key)
    x = jax.random.normal(k_x, (8, embed_dims[0]), jnp.float32)  # [batch=8, input_dim=32]
    params = init_params(k_p, embed_dims, bkg_dims)

    e, b = signature_discovery(x, params)
    jax.block_until_ready((e, b))

    assert e.shape == (8, embed_dims[-1]) and b.shape == (8, bkg_dims[-1])

    e_ref, b_ref = signature_reference(x, params)
    np.testing.assert_allclose(np.asarray(e), np.asarray(e_ref), rtol=2e-5, atol=2e-5)
    np.testing.assert_allclose(np.asarray(b), np.asarray(b_ref), rtol=2e-5, atol=2e-5)

    print("KERNEL_OK")
</pallas_src>

<mosaic_0001>
module attributes {stable_mosaic.version = 11 : i64} {
  func.func @signature_kernel(%arg0: i32, %arg1: memref<8x32xf32, #tpu.memory_space<vmem>>, %arg2: memref<1x32xf32, #tpu.memory_space<vmem>>, %arg3: memref<1x32xf32, #tpu.memory_space<vmem>>, %arg4: memref<32x64xf32, #tpu.memory_space<vmem>>, %arg5: memref<1x64xf32, #tpu.memory_space<vmem>>, %arg6: memref<1x64xf32, #tpu.memory_space<vmem>>, %arg7: memref<1x64xf32, #tpu.memory_space<vmem>>, %arg8: memref<64x16xf32, #tpu.memory_space<vmem>>, %arg9: memref<1x16xf32, #tpu.memory_space<vmem>>, %arg10: memref<1x16xf32, #tpu.memory_space<vmem>>, %arg11: memref<1x16xf32, #tpu.memory_space<vmem>>, %arg12: memref<16x32xf32, #tpu.memory_space<vmem>>, %arg13: memref<1x32xf32, #tpu.memory_space<vmem>>, %arg14: memref<1x32xf32, #tpu.memory_space<vmem>>, %arg15: memref<1x32xf32, #tpu.memory_space<vmem>>, %arg16: memref<32x8xf32, #tpu.memory_space<vmem>>, %arg17: memref<1x8xf32, #tpu.memory_space<vmem>>, %arg18: memref<8x24xf32, #tpu.memory_space<vmem>>) attributes {dimension_semantics = [#tpu.dimension_semantics<parallel>], iteration_bounds = array<i64: 1>, scalar_prefetch = 0 : i64, scratch_operands = 0 : i64, tpu.core_type = #tpu.core_type<tc>, window_params = [{transform_indices = @transform_0, window_bounds = array<i64: 8, 32>}, {pipeline_mode = #tpu.pipeline_mode<synchronous>, transform_indices = @transform_1, window_bounds = array<i64: 1, 32>}, {pipeline_mode = #tpu.pipeline_mode<synchronous>, transform_indices = @transform_2, window_bounds = array<i64: 1, 32>}, {pipeline_mode = #tpu.pipeline_mode<synchronous>, transform_indices = @transform_3, window_bounds = array<i64: 32, 64>}, {pipeline_mode = #tpu.pipeline_mode<synchronous>, transform_indices = @transform_4, window_bounds = array<i64: 1, 64>}, {pipeline_mode = #tpu.pipeline_mode<synchronous>, transform_indices = @transform_5, window_bounds = array<i64: 1, 64>}, {pipeline_mode = #tpu.pipeline_mode<synchronous>, transform_indices = @transform_6, window_bounds = array<i64: 1, 64>}, {pipeline_mode = #tpu.pipeline_mode<synchronous>, transform_indices = @transform_7, window_bounds = array<i64: 64, 16>}, {pipeline_mode = #tpu.pipeline_mode<synchronous>, transform_indices = @transform_8, window_bounds = array<i64: 1, 16>}, {pipeline_mode = #tpu.pipeline_mode<synchronous>, transform_indices = @transform_9, window_bounds = array<i64: 1, 16>}, {pipeline_mode = #tpu.pipeline_mode<synchronous>, transform_indices = @transform_10, window_bounds = array<i64: 1, 16>}, {pipeline_mode = #tpu.pipeline_mode<synchronous>, transform_indices = @transform_11, window_bounds = array<i64: 16, 32>}, {pipeline_mode = #tpu.pipeline_mode<synchronous>, transform_indices = @transform_12, window_bounds = array<i64: 1, 32>}, {pipeline_mode = #tpu.pipeline_mode<synchronous>, transform_indices = @transform_13, window_bounds = array<i64: 1, 32>}, {pipeline_mode = #tpu.pipeline_mode<synchronous>, transform_indices = @transform_14, window_bounds = array<i64: 1, 32>}, {pipeline_mode = #tpu.pipeline_mode<synchronous>, transform_indices = @transform_15, window_bounds = array<i64: 32, 8>}, {pipeline_mode = #tpu.pipeline_mode<synchronous>, transform_indices = @transform_16, window_bounds = array<i64: 1, 8>}, {transform_indices = @transform_17, window_bounds = array<i64: 8, 24>}]} {
    %c0 = arith.constant 0 : index
    %c0_0 = arith.constant 0 : index
    %0 = vector.load %arg1[%c0, %c0_0] : memref<8x32xf32, #tpu.memory_space<vmem>>, vector<8x32xf32>
    %c0_1 = arith.constant 0 : index
    %c0_2 = arith.constant 0 : index
    %1 = vector.load %arg2[%c0_1, %c0_2] : memref<1x32xf32, #tpu.memory_space<vmem>>, vector<1x32xf32>
    %c0_3 = arith.constant 0 : index
    %c0_4 = arith.constant 0 : index
    %2 = vector.load %arg3[%c0_3, %c0_4] : memref<1x32xf32, #tpu.memory_space<vmem>>, vector<1x32xf32>
    %cst = arith.constant dense<0.000000e+00> : vector<8xf32>
    %3 = vector.multi_reduction <add>, %0, %cst [1] : vector<8x32xf32> to vector<8xf32>
    %4 = vector.shape_cast %3 : vector<8xf32> to vector<8x1xf32>
    %cst_5 = arith.constant 3.200000e+01 : f32
    %5 = vector.broadcast %cst_5 : f32 to vector<8x1xf32>
    %6 = arith.divf %4, %5 : vector<8x1xf32>
    %7 = vector.broadcast %6 : vector<8x1xf32> to vector<8x32xf32>
    %8 = arith.subf %0, %7 : vector<8x32xf32>
    %9 = arith.mulf %8, %8 : vector<8x32xf32>
    %cst_6 = arith.constant dense<0.000000e+00> : vector<8xf32>
    %10 = vector.multi_reduction <add>, %9, %cst_6 [1] : vector<8x32xf32> to vector<8xf32>
    %11 = vector.shape_cast %10 : vector<8xf32> to vector<8x1xf32>
    %cst_7 = arith.constant 3.200000e+01 : f32
    %12 = vector.broadcast %cst_7 : f32 to vector<8x1xf32>
    %13 = arith.divf %11, %12 : vector<8x1xf32>
    %14 = vector.broadcast %6 : vector<8x1xf32> to vector<8x32xf32>
    %15 = arith.subf %0, %14 : vector<8x32xf32>
    %cst_8 = arith.constant 9.99999974E-6 : f32
    %16 = vector.broadcast %cst_8 : f32 to vector<8x1xf32>
    %17 = arith.addf %13, %16 : vector<8x1xf32>
    %18 = math.rsqrt %17 : vector<8x1xf32>
    %19 = vector.broadcast %18 : vector<8x1xf32> to vector<8x32xf32>
    %20 = arith.mulf %15, %19 : vector<8x32xf32>
    %21 = vector.broadcast %1 : vector<1x32xf32> to vector<8x32xf32>
    %22 = arith.mulf %20, %21 : vector<8x32xf32>
    %23 = vector.broadcast %2 : vector<1x32xf32> to vector<8x32xf32>
    %24 = arith.addf %22, %23 : vector<8x32xf32>
    %c0_9 = arith.constant 0 : index
    %c0_10 = arith.constant 0 : index
    %25 = vector.load %arg4[%c0_9, %c0_10] : memref<32x64xf32, #tpu.memory_space<vmem>>, vector<32x64xf32>
    %cst_11 = arith.constant dense<0.000000e+00> : vector<8x64xf32>
    %26 = tpu.matmul %24, %25, %cst_11 {dimension_numbers = #tpu.dot_dimension_numbers<[1], [0], [0], [1], [0, 0, 1, 1], [], []>} : vector<8x32xf32>, vector<32x64xf32>, vector<8x64xf32> -> vector<8x64xf32>
    %c0_12 = arith.constant 0 : index
    %c0_13 = arith.constant 0 : index
    %27 = vector.load %arg5[%c0_12, %c0_13] : memref<1x64xf32, #tpu.memory_space<vmem>>, vector<1x64xf32>
    %28 = vector.broadcast %27 : vector<1x64xf32> to vector<8x64xf32>
    %29 = arith.addf %26, %28 : vector<8x64xf32>
    %c0_14 = arith.constant 0 : index
    %c0_15 = arith.constant 0 : index
    %30 = vector.load %arg6[%c0_14, %c0_15] : memref<1x64xf32, #tpu.memory_space<vmem>>, vector<1x64xf32>
    %c0_16 = arith.constant 0 : index
    %c0_17 = arith.constant 0 : index
    %31 = vector.load %arg7[%c0_16, %c0_17] : memref<1x64xf32, #tpu.memory_space<vmem>>, vector<1x64xf32>
    %cst_18 = arith.constant dense<0.000000e+00> : vector<8xf32>
    %32 = vector.multi_reduction <add>, %29, %cst_18 [1] : vector<8x64xf32> to vector<8xf32>
    %33 = vector.shape_cast %32 : vector<8xf32> to vector<8x1xf32>
    %cst_19 = arith.constant 6.400000e+01 : f32
    %34 = vector.broadcast %cst_19 : f32 to vector<8x1xf32>
    %35 = arith.divf %33, %34 : vector<8x1xf32>
    %36 = vector.broadcast %35 : vector<8x1xf32> to vector<8x64xf32>
    %37 = arith.subf %29, %36 : vector<8x64xf32>
    %38 = arith.mulf %37, %37 : vector<8x64xf32>
    %cst_20 = arith.constant dense<0.000000e+00> : vector<8xf32>
    %39 = vector.multi_reduction <add>, %38, %cst_20 [1] : vector<8x64xf32> to vector<8xf32>
    %40 = vector.shape_cast %39 : vector<8xf32> to vector<8x1xf32>
    %cst_21 = arith.constant 6.400000e+01 : f32
    %41 = vector.broadcast %cst_21 : f32 to vector<8x1xf32>
    %42 = arith.divf %40, %41 : vector<8x1xf32>
    %43 = vector.broadcast %35 : vector<8x1xf32> to vector<8x64xf32>
    %44 = arith.subf %29, %43 : vector<8x64xf32>
    %cst_22 = arith.constant 9.99999974E-6 : f32
    %45 = vector.broadcast %cst_22 : f32 to vector<8x1xf32>
    %46 = arith.addf %42, %45 : vector<8x1xf32>
    %47 = math.rsqrt %46 : vector<8x1xf32>
    %48 = vector.broadcast %47 : vector<8x1xf32> to vector<8x64xf32>
    %49 = arith.mulf %44, %48 : vector<8x64xf32>
    %50 = vector.broadcast %30 : vector<1x64xf32> to vector<8x64xf32>
    %51 = arith.mulf %49, %50 : vector<8x64xf32>
    %52 = vector.broadcast %31 : vector<1x64xf32> to vector<8x64xf32>
    %53 = arith.addf %51, %52 : vector<8x64xf32>
    %cst_23 = arith.constant 0.000000e+00 : f32
    %54 = vector.broadcast %cst_23 : f32 to vector<8x64xf32>
    %55 = arith.maximumf %53, %54 : vector<8x64xf32>
    %c0_24 = arith.constant 0 : index
    %c0_25 = arith.constant 0 : index
    %56 = vector.load %arg8[%c0_24, %c0_25] : memref<64x16xf32, #tpu.memory_space<vmem>>, vector<64x16xf32>
    %cst_26 = arith.constant dense<0.000000e+00> : vector<8x16xf32>
    %57 = tpu.matmul %55, %56, %cst_26 {dimension_numbers = #tpu.dot_dimension_numbers<[1], [0], [0], [1], [0, 0, 1, 1], [], []>} : vector<8x64xf32>, vector<64x16xf32>, vector<8x16xf32> -> vector<8x16xf32>
    %c0_27 = arith.constant 0 : index
    %c0_28 = arith.constant 0 : index
    %58 = vector.load %arg9[%c0_27, %c0_28] : memref<1x16xf32, #tpu.memory_space<vmem>>, vector<1x16xf32>
    %59 = vector.broadcast %58 : vector<1x16xf32> to vector<8x16xf32>
    %60 = arith.addf %57, %59 : vector<8x16xf32>
    %c0_29 = arith.constant 0 : index
    %c0_30 = arith.constant 0 : index
    %61 = vector.load %arg10[%c0_29, %c0_30] : memref<1x16xf32, #tpu.memory_space<vmem>>, vector<1x16xf32>
    %c0_31 = arith.constant 0 : index
    %c0_32 = arith.constant 0 : index
    %62 = vector.load %arg11[%c0_31, %c0_32] : memref<1x16xf32, #tpu.memory_space<vmem>>, vector<1x16xf32>
    %cst_33 = arith.constant dense<0.000000e+00> : vector<8xf32>
    %63 = vector.multi_reduction <add>, %60, %cst_33 [1] : vector<8x16xf32> to vector<8xf32>
    %64 = vector.shape_cast %63 : vector<8xf32> to vector<8x1xf32>
    %cst_34 = arith.constant 1.600000e+01 : f32
    %65 = vector.broadcast %cst_34 : f32 to vector<8x1xf32>
    %66 = arith.divf %64, %65 : vector<8x1xf32>
    %67 = vector.broadcast %66 : vector<8x1xf32> to vector<8x16xf32>
    %68 = arith.subf %60, %67 : vector<8x16xf32>
    %69 = arith.mulf %68, %68 : vector<8x16xf32>
    %cst_35 = arith.constant dense<0.000000e+00> : vector<8xf32>
    %70 = vector.multi_reduction <add>, %69, %cst_35 [1] : vector<8x16xf32> to vector<8xf32>
    %71 = vector.shape_cast %70 : vector<8xf32> to vector<8x1xf32>
    %cst_36 = arith.constant 1.600000e+01 : f32
    %72 = vector.broadcast %cst_36 : f32 to vector<8x1xf32>
    %73 = arith.divf %71, %72 : vector<8x1xf32>
    %74 = vector.broadcast %66 : vector<8x1xf32> to vector<8x16xf32>
    %75 = arith.subf %60, %74 : vector<8x16xf32>
    %cst_37 = arith.constant 9.99999974E-6 : f32
    %76 = vector.broadcast %cst_37 : f32 to vector<8x1xf32>
    %77 = arith.addf %73, %76 : vector<8x1xf32>
    %78 = math.rsqrt %77 : vector<8x1xf32>
    %79 = vector.broadcast %78 : vector<8x1xf32> to vector<8x16xf32>
    %80 = arith.mulf %75, %79 : vector<8x16xf32>
    %81 = vector.broadcast %61 : vector<1x16xf32> to vector<8x16xf32>
    %82 = arith.mulf %80, %81 : vector<8x16xf32>
    %83 = vector.broadcast %62 : vector<1x16xf32> to vector<8x16xf32>
    %84 = arith.addf %82, %83 : vector<8x16xf32>
    %c0_38 = arith.constant 0 : index
    %c0_39 = arith.constant 0 : index
    %85 = vector.load %arg12[%c0_38, %c0_39] : memref<16x32xf32, #tpu.memory_space<vmem>>, vector<16x32xf32>
    %cst_40 = arith.constant dense<0.000000e+00> : vector<8x32xf32>
    %86 = tpu.matmul %84, %85, %cst_40 {dimension_numbers = #tpu.dot_dimension_numbers<[1], [0], [0], [1], [0, 0, 1, 1], [], []>} : vector<8x16xf32>, vector<16x32xf32>, vector<8x32xf32> -> vector<8x32xf32>
    %c0_41 = arith.constant 0 : index
    %c0_42 = arith.constant 0 : index
    %87 = vector.load %arg13[%c0_41, %c0_42] : memref<1x32xf32, #tpu.memory_space<vmem>>, vector<1x32xf32>
    %88 = vector.broadcast %87 : vector<1x32xf32> to vector<8x32xf32>
    %89 = arith.addf %86, %88 : vector<8x32xf32>
    %c0_43 = arith.constant 0 : index
    %c0_44 = arith.constant 0 : index
    %90 = vector.load %arg14[%c0_43, %c0_44] : memref<1x32xf32, #tpu.memory_space<vmem>>, vector<1x32xf32>
    %c0_45 = arith.constant 0 : index
    %c0_46 = arith.constant 0 : index
    %91 = vector.load %arg15[%c0_45, %c0_46] : memref<1x32xf32, #tpu.memory_space<vmem>>, vector<1x32xf32>
    %cst_47 = arith.constant dense<0.000000e+00> : vector<8xf32>
    %92 = vector.multi_reduction <add>, %89, %cst_47 [1] : vector<8x32xf32> to vector<8xf32>
    %93 = vector.shape_cast %92 : vector<8xf32> to vector<8x1xf32>
    %cst_48 = arith.constant 3.200000e+01 : f32
    %94 = vector.broadcast %cst_48 : f32 to vector<8x1xf32>
    %95 = arith.divf %93, %94 : vector<8x1xf32>
    %96 = vector.broadcast %95 : vector<8x1xf32> to vector<8x32xf32>
    %97 = arith.subf %89, %96 : vector<8x32xf32>
    %98 = arith.mulf %97, %97 : vector<8x32xf32>
    %cst_49 = arith.constant dense<0.000000e+00> : vector<8xf32>
    %99 = vector.multi_reduction <add>, %98, %cst_49 [1] : vector<8x32xf32> to vector<8xf32>
    %100 = vector.shape_cast %99 : vector<8xf32> to vector<8x1xf32>
    %cst_50 = arith.constant 3.200000e+01 : f32
    %101 = vector.broadcast %cst_50 : f32 to vector<8x1xf32>
    %102 = arith.divf %100, %101 : vector<8x1xf32>
    %103 = vector.broadcast %95 : vector<8x1xf32> to vector<8x32xf32>
    %104 = arith.subf %89, %103 : vector<8x32xf32>
    %cst_51 = arith.constant 9.99999974E-6 : f32
    %105 = vector.broadcast %cst_51 : f32 to vector<8x1xf32>
    %106 = arith.addf %102, %105 : vector<8x1xf32>
    %107 = math.rsqrt %106 : vector<8x1xf32>
    %108 = vector.broadcast %107 : vector<8x1xf32> to vector<8x32xf32>
    %109 = arith.mulf %104, %108 : vector<8x32xf32>
    %110 = vector.broadcast %90 : vector<1x32xf32> to vector<8x32xf32>
    %111 = arith.mulf %109, %110 : vector<8x32xf32>
    %112 = vector.broadcast %91 : vector<1x32xf32> to vector<8x32xf32>
    %113 = arith.addf %111, %112 : vector<8x32xf32>
    %cst_52 = arith.constant 0.000000e+00 : f32
    %114 = vector.broadcast %cst_52 : f32 to vector<8x32xf32>
    %115 = arith.maximumf %113, %114 : vector<8x32xf32>
    %c0_53 = arith.constant 0 : index
    %c0_54 = arith.constant 0 : index
    %116 = vector.load %arg16[%c0_53, %c0_54] : memref<32x8xf32, #tpu.memory_space<vmem>>, vector<32x8xf32>
    %cst_55 = arith.constant dense<0.000000e+00> : vector<8x8xf32>
    %117 = tpu.matmul %115, %116, %cst_55 {dimension_numbers = #tpu.dot_dimension_numbers<[1], [0], [0], [1], [0, 0, 1, 1], [], []>} : vector<8x32xf32>, vector<32x8xf32>, vector<8x8xf32> -> vector<8x8xf32>
    %c0_56 = arith.constant 0 : index
    %c0_57 = arith.constant 0 : index
    %118 = vector.load %arg17[%c0_56, %c0_57] : memref<1x8xf32, #tpu.memory_space<vmem>>, vector<1x8xf32>
    %119 = vector.broadcast %118 : vector<1x8xf32> to vector<8x8xf32>
    %120 = arith.addf %117, %119 : vector<8x8xf32>
    %c0_58 = arith.constant 0 : index
    %c0_59 = arith.constant 0 : index
    %121 = vector.load %arg18[%c0_58, %c0_59] : memref<8x24xf32, #tpu.memory_space<vmem>>, vector<8x16xf32>
    tpu.vector_store %arg18[%c0_58, %c0_59], %60 {strides = array<i32>} : memref<8x24xf32, #tpu.memory_space<vmem>>, vector<8x16xf32>,
    %c0_60 = arith.constant 0 : index
    %c16 = arith.constant 16 : index
    %122 = vector.load %arg18[%c0_60, %c16] : memref<8x24xf32, #tpu.memory_space<vmem>>, vector<8x8xf32>
    tpu.vector_store %arg18[%c0_60, %c16], %120 {strides = array<i32>} : memref<8x24xf32, #tpu.memory_space<vmem>>, vector<8x8xf32>,
    return
  }
  func.func @transform_0(%arg0: i32) -> (i32, i32) {
    %c0_i32 = arith.constant 0 : i32
    %c0_i32_0 = arith.constant 0 : i32
    return %arg0, %c0_i32 : i32, i32
  }
  func.func @transform_1(%arg0: i32) -> (i32, i32) {
    %c0_i32 = arith.constant 0 : i32
    %c0_i32_0 = arith.constant 0 : i32
    %c0_i32_1 = arith.constant 0 : i32
    return %c0_i32, %c0_i32_0 : i32, i32
  }
  func.func @transform_2(%arg0: i32) -> (i32, i32) {
    %c0_i32 = arith.constant 0 : i32
    %c0_i32_0 = arith.constant 0 : i32
    %c0_i32_1 = arith.constant 0 : i32
    return %c0_i32, %c0_i32_0 : i32, i32
  }
  func.func @transform_3(%arg0: i32) -> (i32, i32) {
    %c0_i32 = arith.constant 0 : i32
    %c0_i32_0 = arith.constant 0 : i32
    %c0_i32_1 = arith.constant 0 : i32
    return %c0_i32, %c0_i32_0 : i32, i32
  }
  func.func @transform_4(%arg0: i32) -> (i32, i32) {
    %c0_i32 = arith.constant 0 : i32
    %c0_i32_0 = arith.constant 0 : i32
    %c0_i32_1 = arith.constant 0 : i32
    return %c0_i32, %c0_i32_0 : i32, i32
  }
  func.func @transform_5(%arg0: i32) -> (i32, i32) {
    %c0_i32 = arith.constant 0 : i32
    %c0_i32_0 = arith.constant 0 : i32
    %c0_i32_1 = arith.constant 0 : i32
    return %c0_i32, %c0_i32_0 : i32, i32
  }
  func.func @transform_6(%arg0: i32) -> (i32, i32) {
    %c0_i32 = arith.constant 0 : i32
    %c0_i32_0 = arith.constant 0 : i32
    %c0_i32_1 = arith.constant 0 : i32
    return %c0_i32, %c0_i32_0 : i32, i32
  }
  func.func @transform_7(%arg0: i32) -> (i32, i32) {
    %c0_i32 = arith.constant 0 : i32
    %c0_i32_0 = arith.constant 0 : i32
    %c0_i32_1 = arith.constant 0 : i32
    return %c0_i32, %c0_i32_0 : i32, i32
  }
  func.func @transform_8(%arg0: i32) -> (i32, i32) {
    %c0_i32 = arith.constant 0 : i32
    %c0_i32_0 = arith.constant 0 : i32
    %c0_i32_1 = arith.constant 0 : i32
    return %c0_i32, %c0_i32_0 : i32, i32
  }
  func.func @transform_9(%arg0: i32) -> (i32, i32) {
    %c0_i32 = arith.constant 0 : i32
    %c0_i32_0 = arith.constant 0 : i32
    %c0_i32_1 = arith.constant 0 : i32
    return %c0_i32, %c0_i32_0 : i32, i32
  }
  func.func @transform_10(%arg0: i32) -> (i32, i32) {
    %c0_i32 = arith.constant 0 : i32
    %c0_i32_0 = arith.constant 0 : i32
    %c0_i32_1 = arith.constant 0 : i32
    return %c0_i32, %c0_i32_0 : i32, i32
  }
  func.func @transform_11(%arg0: i32) -> (i32, i32) {
    %c0_i32 = arith.constant 0 : i32
    %c0_i32_0 = arith.constant 0 : i32
    %c0_i32_1 = arith.constant 0 : i32
    return %c0_i32, %c0_i32_0 : i32, i32
  }
  func.func @transform_12(%arg0: i32) -> (i32, i32) {
    %c0_i32 = arith.constant 0 : i32
    %c0_i32_0 = arith.constant 0 : i32
    %c0_i32_1 = arith.constant 0 : i32
    return %c0_i32, %c0_i32_0 : i32, i32
  }
  func.func @transform_13(%arg0: i32) -> (i32, i32) {
    %c0_i32 = arith.constant 0 : i32
    %c0_i32_0 = arith.constant 0 : i32
    %c0_i32_1 = arith.constant 0 : i32
    return %c0_i32, %c0_i32_0 : i32, i32
  }
  func.func @transform_14(%arg0: i32) -> (i32, i32) {
    %c0_i32 = arith.constant 0 : i32
    %c0_i32_0 = arith.constant 0 : i32
    %c0_i32_1 = arith.constant 0 : i32
    return %c0_i32, %c0_i32_0 : i32, i32
  }
  func.func @transform_15(%arg0: i32) -> (i32, i32) {
    %c0_i32 = arith.constant 0 : i32
    %c0_i32_0 = arith.constant 0 : i32
    %c0_i32_1 = arith.constant 0 : i32
    return %c0_i32, %c0_i32_0 : i32, i32
  }
  func.func @transform_16(%arg0: i32) -> (i32, i32) {
    %c0_i32 = arith.constant 0 : i32
    %c0_i32_0 = arith.constant 0 : i32
    %c0_i32_1 = arith.constant 0 : i32
    return %c0_i32, %c0_i32_0 : i32, i32
  }
  func.func @transform_17(%arg0: i32) -> (i32, i32) {
    %c0_i32 = arith.constant 0 : i32
    %c0_i32_0 = arith.constant 0 : i32
    return %arg0, %c0_i32 : i32, i32
  }
}

</mosaic_0001>

<bundles_post_ra>
// kernel: signature_discovery.1
= control target key start
LH: loop header
LB: loop body
LE: loop exit
PB: predicated region body
PF: predicated region fallthrough
CT: control target
= control target key end

     0   :  { %vm59_vm0 = vcmask 261120   ;;  %v655_v7 = vmov 0.0|0.0   ;;  %vm656_vm1 = vmmov 0   ;;  %v657_v11 = vmov 0.0   ;;  %s658_s27 = smov 16   ;;  %s878_s0 = inlined_call_operand.vmem [shape: f32[8,32], index: 0, kind: input, shape index: {}]   ;;  %s879_s3 = inlined_call_operand.vmem [shape: f32[32,64], index: 3, kind: input, shape index: {}]   ;;  %s880_s1 = inlined_call_operand.vmem [shape: f32[1,32], index: 1, kind: input, shape index: {}]   ;;  %s881_s2 = inlined_call_operand.vmem [shape: f32[1,32], index: 2, kind: input, shape index: {}]   ;;  %s882_s4 = inlined_call_operand.vmem [shape: f32[1,64], index: 4, kind: input, shape index: {}]   ;;  %s883_s7 = inlined_call_operand.vmem [shape: f32[64,16], index: 7, kind: input, shape index: {}]   ;;  %s884_s5 = inlined_call_operand.vmem [shape: f32[1,64], index: 5, kind: input, shape index: {}]   ;;  %s885_s6 = inlined_call_operand.vmem [shape: f32[1,64], index: 6, kind: input, shape index: {}]   ;;  %s886_s8 = inlined_call_operand.vmem [shape: f32[1,16], index: 8, kind: input, shape index: {}]   ;;  %s887_s17 = inlined_call_operand.vmem [shape: f32[8,24], index: 17, kind: output, shape index: {}]   ;;  %s888_s11 = inlined_call_operand.vmem [shape: f32[16,32], index: 11, kind: input, shape index: {}]   ;;  %s889_s9 = inlined_call_operand.vmem [shape: f32[1,16], index: 9, kind: input, shape index: {}]   ;;  %s890_s10 = inlined_call_operand.vmem [shape: f32[1,16], index: 10, kind: input, shape index: {}]   ;;  %s891_s12 = inlined_call_operand.vmem [shape: f32[1,32], index: 12, kind: input, shape index: {}]   ;;  %s892_s15 = inlined_call_operand.vmem [shape: f32[32,8], index: 15, kind: input, shape index: {}]   ;;  %s893_s13 = inlined_call_operand.vmem [shape: f32[1,32], index: 13, kind: input, shape index: {}]   ;;  %s894_s14 = inlined_call_operand.vmem [shape: f32[1,32], index: 14, kind: input, shape index: {}]   ;;  %s895_s16 = inlined_call_operand.vmem [shape: f32[1,8], index: 16, kind: input, shape index: {}]  }
   0x1   :  { %897 = sst [smem:[#allocation2_spill]] %s878_s0  ;;  %616 = vmatprep.subr.bf16.mxu0 %v655_v7  ;;  %576 = vmatprep.mubr.msk.f32.mxu0 %vm656_vm1, %v657_v11  ;;  %v530_v19 = vld [vmem:[%s880_s1] ss:$0 sm:$0xff]  ;;  %vm174_vm2 = vcmask 523264   ;;  %v205_v35 = vld [vmem:[%s883_s7 + $0x8] sm:$0xff]  ;;  %v206_v36 = vld [vmem:[%s883_s7 + $0x10] sm:$0xff] }
   0x2   :  { %898 = sst [smem:[#allocation3_spill]] %s879_s3  ;;  %s899_s26 = sld [smem:[#allocation2_spill]]  ;;  %622 = vmatprep.subr.bf16.mxu1 %v655_v7  ;;  %595 = vmatprep.mubr.msk.f32.mxu1 %vm656_vm1, %v657_v11  ;;  %v531_v21 = vld [vmem:[%s881_s2] ss:$0 sm:$0xff]  ;;  %v207_v38 = vld [vmem:[%s883_s7 + $0x18] sm:$0xff]  ;;  %v209_v41 = vld [vmem:[%s883_s7 + $0x28] sm:$0xff] }
   0x3   :  { %s900_s29 = sld [smem:[#allocation3_spill]]  ;;  %v532_v24 = vld [vmem:[%s882_s4] ss:$0 sm:$0xff]  ;;  %v626_v39 = vpack.c.bf16 %v207_v38, %v206_v36  ;;  %v210_v43 = vld [vmem:[%s883_s7 + $0x30] sm:$0xff]  ;;  %v211_v44 = vld [vmem:[%s883_s7 + $0x38] sm:$0xff]  ;;  %vm294_vm3 = vcmask 130048  }
   0x4   :  { %v204_v34 = vld [vmem:[%s883_s7] sm:$0xff]  ;;  %v632_v45 = vpack.c.bf16 %v211_v44, %v210_v43  ;;  %vm524_vm4 = vcmask 195712  }
   0x5   :  { %v623_v37 = vpack.c.bf16 %v205_v35, %v204_v34  ;;  %v208_v40 = vld [vmem:[%s883_s7 + $0x20] sm:$0xff] }
   0x6   :  { %v629_v42 = vpack.c.bf16 %v209_v41, %v208_v40  ;;  %v534_v50 = vld [vmem:[%s884_s5] ss:$0 sm:$0xff] }
   0x7   :  { %624 = vmatpush3.bf16.msra.mxu1 %v623_v37  ;;  %v535_v52 = vld [vmem:[%s885_s6] ss:$0 sm:$0xff] }
   0x8   :  { %v56_v0 = vld [vmem:[%s899_s26] sm:$0xff]  ;;  %625 = vmatprep.subr.bf16.mxu1 %v655_v7 }
   0x9   :  { %v60_v1 = vsel %vm59_vm0, %v56_v0, 0.0  ;;  %v88_v8 = vld [vmem:[%s900_s29] sm:$0xff]  ;;  %v89_v9 = vld [vmem:[%s900_s29 + $0x8] sm:$0xff]  ;;  %v90_v10 = vld [vmem:[%s900_s29 + $0x10] sm:$0xff] }
   0xa   :  { %61 = vadd.xlane.f32.xlu0 %v60_v1  ;;  %v617_v12 = vpack.c.bf16 %v89_v9, %v88_v8  ;;  %v91_v13 = vld [vmem:[%s900_s29 + $0x18] sm:$0xff]  ;;  %v536_v56 = vld [vmem:[%s886_s8] ss:$0 sm:$0xff] }
   0xb   :  { %v620_v14 = vpack.c.bf16 %v91_v13, %v90_v10  ;;  %627 = vmatpush3.bf16.msra.mxu1 %v626_v39  ;;  %v538_v10 = vld [vmem:[%s889_s9] ss:$0 sm:$0xff] }
   0xc   :  { %618 = vmatpush3.bf16.msra.mxu0 %v617_v12  ;;  %628 = vmatprep.subr.bf16.mxu1 %v655_v7  ;;  %v539_v13 = vld [vmem:[%s890_s10] ss:$0 sm:$0xff] }
   0xd   :  { %619 = vmatprep.subr.bf16.mxu0 %v655_v7  ;;  %v542_v35 = vld [vmem:[%s893_s13] ss:$0 sm:$0xff] }
   0xe   :  { %v543_v36 = vld [vmem:[%s894_s14] ss:$0 sm:$0xff] }
   0xf   :  { %630 = vmatpush3.bf16.msra.mxu1 %v629_v42  ;;  %v544_v40 = vld [vmem:[%s895_s16] ss:$0 sm:$0xff] }
  0x10   :  { %621 = vmatpush3.bf16.msra.mxu0 %v620_v14  ;;  %631 = vmatprep.subr.bf16.mxu1 %v655_v7 }
  0x11   :  { %634 = vmatprep.subr.bf16.mxu0 %v655_v7 }
  0x13   :  { %633 = vmatpush3.bf16.msra.mxu1 %v632_v45 }
  0x97   :  { %v62_v2 = vpop.xlane.xlu0 %61 }
  0x98   :  { %v64_v3 = vmul.f32 0.03125, %v62_v2  ;;  %v323_v2 = vld [vmem:[%s888_s11] sm:$0xff] }
  0x9a   :  { %v65_v4 = vsub.f32 %v56_v0, %v64_v3  ;;  %v324_v3 = vld [vmem:[%s888_s11 + $0x8] sm:$0xff] }
  0x9c   :  { %v66_v5 = vmul.f32 %v65_v4, %v65_v4 }
  0x9e   :  { %v67_v6 = vsel %vm59_vm0, %v66_v5, 0.0 }
  0x9f   :  { %68 = vadd.xlane.f32.xlu0 %v67_v6 }
 0x12c   :  { %v69_v15 = vpop.xlane.xlu0 %68 }
 0x12d   :  { %v70_v16 = vmul.f32 0.03125, %v69_v15 }
 0x12f   :  { %v71_v17 = vadd.f32 1e-05, %v70_v16  ;;  %v540_v16 = vld [vmem:[%s891_s12] ss:$0 sm:$0xff] }
 0x131   :  { %647 = vrsqrt.f32 %v71_v17 }
 0x13b   :  { %v648_v18 = vpop.eup %647 }
 0x13c   :  { %v73_v20 = vmul.f32 %v648_v18, %v65_v4  ;;  %v635_v4 = vpack.c.bf16 %v324_v3, %v323_v2 }
 0x13e   :  { %v80_v22 = vmul.f32 %v530_v19, %v73_v20 }
 0x140   :  { %v87_v23 = vadd.f32 %v531_v21, %v80_v22 }
 0x142   :  { %577 = vmatmul.mubr.msk.f32.vlgmr.msra.gmra.mrb[0].mxu0 %vm59_vm0, %v87_v23 }
 0x143   :  { %602 = vmatprep.mubr.msk.f32.mxu0 %vm656_vm1, %v657_v11  ;;  %636 = vmatpush3.bf16.msra.mxu0 %v635_v4 }
 0x144   :  { %637 = vmatprep.subr.bf16.mxu0 %v655_v7 }
 0x215   :  { %v168_v25 = vpop.f32.mrb[0].mxu0 }
 0x216   :  { %v169_v26 = vadd.f32 %v532_v24, %v168_v25  ;;  %v578_v27 = vpop.f32.mrb[1].mxu0 }
 0x218   :  { %v175_v28 = vsel %vm174_vm2, %v169_v26, 0.0 }
 0x219   :  { %176 = vadd.xlane.f32.xlu1 %v175_v28  ;;  %v437_v28 = vld [vmem:[%s892_s15 + $0x10] sm:$0xff] }
 0x2a6   :  { %v177_v29 = vpop.xlane.xlu1 %176 }
 0x2a7   :  { %v179_v30 = vmul.f32 0.015625, %v177_v29  ;;  %v438_v29 = vld [vmem:[%s892_s15 + $0x18] sm:$0xff] }
 0x2a9   :  { %v180_v31 = vsub.f32 %v169_v26, %v179_v30  ;;  %v436_v26 = vld [vmem:[%s892_s15 + $0x8] sm:$0xff]  ;;  %v641_v30 = vpack.c.bf16 %v438_v29, %v437_v28 }
 0x2ab   :  { %v181_v32 = vmul.f32 %v180_v31, %v180_v31 }
 0x2ad   :  { %v182_v33 = vsel %vm174_vm2, %v181_v32, 0.0 }
 0x2ae   :  { %183 = vadd.xlane.f32.xlu1 %v182_v33 }
 0x33b   :  { %v184_v46 = vpop.xlane.xlu1 %183 }
 0x33c   :  { %v185_v47 = vmul.f32 0.015625, %v184_v46 }
 0x33e   :  { %v186_v48 = vadd.f32 1e-05, %v185_v47 }
 0x340   :  { %649 = vrsqrt.f32 %v186_v48 }
 0x34a   :  { %v650_v49 = vpop.eup %649 }
 0x34b   :  { %v188_v51 = vmul.f32 %v650_v49, %v180_v31 }
 0x34d   :  { %v195_v53 = vmul.f32 %v534_v50, %v188_v51 }
 0x34f   :  { %v202_v54 = vadd.f32 %v535_v52, %v195_v53 }
 0x351   :  { %v203_v55 = vmax.f32 %v202_v54, 0.0 }
 0x353   :  { %596 = vmatmul.mubr.msk.f32.vlgmr.msra.gmra.mrb[0].mxu1 %vm174_vm2, %v203_v55 }
 0x426   :  { %v288_v57 = vpop.f32.mrb[0].mxu1 }
 0x427   :  { %v289_v58 = vadd.f32 %v536_v56, %v288_v57  ;;  %v597_v59 = vpop.f32.mrb[1].mxu1 }
 0x429   :  { %v295_v60 = vsel %vm294_vm3, %v289_v58, 0.0  ;;  %519 = vst.msk [vmem:[%s887_s17] sm:$0xff] %vm294_vm3, %v289_v58 }
 0x42a   :  { %296 = vadd.xlane.f32.xlu0 %v295_v60 }
 0x4b7   :  { %v297_v61 = vpop.xlane.xlu0 %296 }
 0x4b8   :  { %v299_v62 = vmul.f32 0.0625, %v297_v61 }
 0x4ba   :  { %v300_v63 = vsub.f32 %v289_v58, %v299_v62 }
 0x4bc   :  { %v301_v0 = vmul.f32 %v300_v63, %v300_v63 }
 0x4be   :  { %v302_v1 = vsel %vm294_vm3, %v301_v0, 0.0 }
 0x4bf   :  { %303 = vadd.xlane.f32.xlu1 %v302_v1 }
 0x54c   :  { %v304_v5 = vpop.xlane.xlu1 %303 }
 0x54d   :  { %v305_v6 = vmul.f32 0.0625, %v304_v5 }
 0x54f   :  { %v306_v8 = vadd.f32 1e-05, %v305_v6 }
 0x551   :  { %651 = vrsqrt.f32 %v306_v8 }
 0x55b   :  { %v652_v9 = vpop.eup %651 }
 0x55c   :  { %v308_v12 = vmul.f32 %v652_v9, %v300_v63 }
 0x55e   :  { %v315_v14 = vmul.f32 %v538_v10, %v308_v12 }
 0x560   :  { %v322_v15 = vadd.f32 %v539_v13, %v315_v14 }
 0x562   :  { %603 = vmatmul.mubr.msk.f32.vlgmr.msra.gmra.mrb[2].mxu0 %vm294_vm3, %v322_v15 }
 0x563   :  { %613 = vmatprep.mubr.msk.f32.mxu0 %vm656_vm1, %v657_v11  ;;  %v435_v11 = vld [vmem:[%s892_s15] sm:$0xff] }
 0x564   :  { %v638_v27 = vpack.c.bf16 %v436_v26, %v435_v11 }
 0x566   :  { %639 = vmatpush3.bf16.msra.mxu0 %v638_v27 }
 0x567   :  { %640 = vmatprep.subr.bf16.mxu0 %v655_v7 }
 0x56a   :  { %642 = vmatpush3.bf16.msra.mxu0 %v641_v30 }
 0x635   :  { %v401_v17 = vpop.f32.mrb[2].mxu0 }
 0x636   :  { %v402_v18 = vadd.f32 %v540_v16, %v401_v17  ;;  %v604_v19 = vpop.f32.mrb[3].mxu0 }
 0x638   :  { %v407_v20 = vsel %vm59_vm0, %v402_v18, 0.0 }
 0x639   :  { %408 = vadd.xlane.f32.xlu0 %v407_v20 }
 0x6c6   :  { %v409_v21 = vpop.xlane.xlu0 %408 }
 0x6c7   :  { %v410_v22 = vmul.f32 0.03125, %v409_v21 }
 0x6c9   :  { %v411_v23 = vsub.f32 %v402_v18, %v410_v22 }
 0x6cb   :  { %v412_v24 = vmul.f32 %v411_v23, %v411_v23 }
 0x6cd   :  { %v413_v25 = vsel %vm59_vm0, %v412_v24, 0.0 }
 0x6ce   :  { %414 = vadd.xlane.f32.xlu1 %v413_v25 }
 0x75b   :  { %v415_v31 = vpop.xlane.xlu1 %414 }
 0x75c   :  { %v416_v32 = vmul.f32 0.03125, %v415_v31 }
 0x75e   :  { %v417_v33 = vadd.f32 1e-05, %v416_v32 }
 0x760   :  { %653 = vrsqrt.f32 %v417_v33 }
 0x76a   :  { %v654_v34 = vpop.eup %653 }
 0x76b   :  { %v419_v7 = vmul.f32 %v654_v34, %v411_v23 }
 0x76d   :  { %v426_v37 = vmul.f32 %v542_v35, %v419_v7 }
 0x76f   :  { %v433_v38 = vadd.f32 %v543_v36, %v426_v37 }
 0x771   :  { %v434_v39 = vmax.f32 %v433_v38, 0.0 }
 0x773   :  { %614 = vmatmul.mubr.msk.f32.vlgmr.msra.gmra.mrb[4].mxu0 %vm59_vm0, %v434_v39 }
 0x846   :  { %v515_v41 = vpop.f32.mrb[4].mxu0 }
 0x847   :  { %v516_v42 = vadd.f32 %v544_v40, %v515_v41  ;;  %v615_v43 = vpop.f32.mrb[5].mxu0 }
 0x849   :  { %521 = vrot.lane.b32.xlu0 %v516_v42, %s658_s27 }
 0x8bb   :  { %v522_v44 = vpop.permute.xlu0 %521 }
 0x8bc   :  { %525 = vst.msk [vmem:[%s887_s17] sm:$0xff] %vm524_vm4, %v522_v44 }

</bundles_post_ra>
